<compile_context>
chip_gen: v6e
topology: v6e:2x2x1
jax: 0.10.0
libtpu: 0.0.40
codegen_flags: <defaults>
</compile_context>

<pallas_src>
import functools
import math

import jax
import jax.numpy as jnp
from jax import lax
from jax.experimental import pallas as pl
from jax.experimental.pallas import tpu as pltpu


def _round_up(x, m):
    return ((x + m - 1) // m) * m


def _largest_divisor_leq(n, cap):
    for d in range(min(cap, n), 0, -1):
        if n % d == 0:
            return d
    return 1


# ---------------------------------------------------------------------------
# Pallas kernel: fused im2col + single-contraction matmul for Nb samples/step.
#   x_ref     : (Nb, C, L_pad)   zero-padded input, spatial flattened
#   w_ref     : (O, K)           weight, K = KH*KW*C in (kh, kw, c) order
#   b_ref     : (O, 1)           bias column (f32)
#   o_ref     : (Nb, O, M_pad)   output, lane axis = flattened (H_out, W_out)
#   patch_ref : (K, Nb*M_pad)    VMEM scratch holding the stacked taps
# ---------------------------------------------------------------------------
def _fused_conv_kernel(x_ref, w_ref, b_ref, o_ref, patch_ref, *,
                       nb, c, kh, kw, w_img, pad_w, m_pad):
    # Static per-dw lane masks: lane i -> output column w = i % W; tap (.,dw)
    # is valid iff 0 <= w + dw - pad_w < W (out-of-row reads are zeroed).
    col = lax.broadcasted_iota(jnp.int32, (1, m_pad), 1) % w_img
    masks = []
    for dw in range(kw):
        off = dw - pad_w
        if off == 0:
            masks.append(None)                       # center column: always valid
        else:
            masks.append((col + off >= 0) & (col + off < w_img))

    # Build the (K, Nb*M_pad) im2col slab from short-lived ref-slice loads.
    for b in range(nb):
        for idx in range(kh * kw):
            dh, dw = divmod(idx, kw)
            start = dh * w_img + dw                  # static, contiguous slice
            xs = x_ref[b, :, start:start + m_pad]    # (C, M_pad)
            if masks[dw] is not None:
                xs = jnp.where(masks[dw], xs, jnp.zeros_like(xs))
            patch_ref[idx * c:(idx + 1) * c, b * m_pad:(b + 1) * m_pad] = xs

    # One MXU matmul over the full contraction K = C*KH*KW, f32 accumulation.
    acc = jnp.dot(w_ref[...], patch_ref[...],
                  preferred_element_type=jnp.float32)        # (O, Nb*M_pad)
    acc = acc + b_ref[...]                                   # bias epilogue

    for b in range(nb):              # M_pad is 128-aligned -> lane-dense stores
        o_ref[b] = acc[:, b * m_pad:(b + 1) * m_pad].astype(o_ref.dtype)


# ---------------------------------------------------------------------------
# Wrapper: NCHW conv2d (stride=1, padding=pad) -> fused Pallas kernel
# ---------------------------------------------------------------------------
@functools.partial(jax.jit, static_argnames=("padding", "use_bf16"))
def triton_conv2d(x, weight, bias, *, padding=1, use_bf16=False):
    N, C, H, W = x.shape
    O, C_in, KH, KW = weight.shape
    out_dtype = x.dtype

    assert C_in == C, "groups != 1 not supported"
    assert 2 * padding == KW - 1, \
        "kernel requires stride=1 same-width conv (2*padding == KW-1)"
    # TODO(synk): general stride/dilation/width would need the W_pad
    # junk-column variant or halo'd manual DMA; not needed for the tested conv.

    H_out = H + 2 * padding - KH + 1
    W_out = W + 2 * padding - KW + 1          # == W by the assert above
    M = H_out * W_out                         # valid lanes per sample
    M_pad = _round_up(M, 128)                 # lane-dense output block

    # Flattened-input geometry: for output lane i = h*W + w and tap (dh, dw),
    # the needed input sits at flat index i + dh*W + dw in the padded array
    # [pad*W + pad zeros] ++ x.reshape(H*W) ++ [tail zeros].
    lead = padding * W + padding
    max_start = (KH - 1) * W + (KW - 1)
    L_pad = _round_up(max(lead + H * W, max_start + M_pad), 128)

    cdt = jnp.bfloat16 if use_bf16 else x.dtype
    # Single fused pad(+cast) pass over x — no 2-D spatial pad, no second pad.
    x_flat = jnp.pad(x.reshape(N, C, H * W).astype(cdt),
                     ((0, 0), (0, 0), (lead, L_pad - lead - H * W)))

    K = KH * KW * C
    wk = jnp.transpose(weight, (0, 2, 3, 1)).reshape(O, K).astype(cdt)
    b2 = bias.reshape(O, 1).astype(jnp.float32)

    # --- batch blocking / VMEM budget --------------------------------------
    esz_in = jnp.dtype(cdt).itemsize
    esz_out = jnp.dtype(out_dtype).itemsize
    per_sample = (2 * C * L_pad * esz_in          # double-buffered input
                  + 2 * O * M_pad * esz_out       # double-buffered output
                  + K * M_pad * esz_in)           # im2col scratch share
    fixed = O * K * esz_in + O * 128 * 4 + (1 << 16)
    budget = 24 * 1024 * 1024                     # fits v7x's scoped default
    nb_cap = max(1, min(8, (budget - fixed) // max(per_sample, 1)))
    if N >= 8:
        nb_cap = min(nb_cap, max(1, N // 8))      # keep >=8 steps for pipelining
    else:
        nb_cap = 1                                # tiny batch: feed both v7x TCs
    nb = _largest_divisor_leq(N, int(nb_cap))
    # TODO(synk): if even nb=1 exceeds the budget (huge C*H*W), add an H_out-row
    # grid axis with a (KH-1)-row halo instead of whole-sample blocks.

    vmem_need = fixed + nb * per_sample
    cp_kwargs = dict(dimension_semantics=("parallel",))
    if 2 * vmem_need > 16 * 1024 * 1024:          # raise only when needed
        cp_kwargs["vmem_limit_bytes"] = int(
            min(64 * 1024 * 1024, max(32 * 1024 * 1024, 2 * vmem_need)))

    kernel = functools.partial(_fused_conv_kernel, nb=nb, c=C, kh=KH, kw=KW,
                               w_img=W, pad_w=padding, m_pad=M_pad)

    out = pl.pallas_call(
        kernel,
        out_shape=jax.ShapeDtypeStruct((N, O, M_pad), out_dtype),
        grid_spec=pltpu.PrefetchScalarGridSpec(
            num_scalar_prefetch=0,
            grid=(N // nb,),
            in_specs=[
                pl.BlockSpec((nb, C, L_pad), lambda n: (n, 0, 0)),  # per-step input
                pl.BlockSpec((O, K), lambda n: (0, 0)),             # resident weight
                pl.BlockSpec((O, 1), lambda n: (0, 0)),             # resident bias
            ],
            out_specs=pl.BlockSpec((nb, O, M_pad), lambda n: (n, 0, 0)),
            scratch_shapes=[pltpu.VMEM((K, nb * M_pad), cdt)],
        ),
        compiler_params=pltpu.CompilerParams(**cp_kwargs),
    )(x_flat, wk, b2)

    if M_pad == M:                                # 16x16 test: free reshape only
        return out.reshape(N, O, H_out, W_out)
    return out[:, :, :M].reshape(N, O, H_out, W_out)


if __name__ == "__main__":
    key = jax.random.PRNGKey(0)
    kx, kwt, kb = jax.random.split(key, 3)

    # Conv2d(in=4, out=8, kernel=3, stride=1, padding=1) on a 2x4x16x16 input.
    N, C, H, W = 2, 4, 16, 16
    O, KH, KW = 8, 3, 3

    x = jax.random.normal(kx, (N, C, H, W), dtype=jnp.float32)
    fan_in = C * KH * KW
    bound = 1.0 / math.sqrt(fan_in)
    weight = jax.random.uniform(kwt, (O, C, KH, KW), jnp.float32, -bound, bound)
    bias = jax.random.uniform(kb, (O,), jnp.float32, -bound, bound)

    # Reference: same semantics as torch Conv2d(stride=1, padding=1).
    ref = lax.conv_general_dilated(
        x, weight, window_strides=(1, 1), padding=((1, 1), (1, 1)),
        dimension_numbers=("NCHW", "OIHW", "NCHW")) + bias[None, :, None, None]

    # f32 path (exact-tolerance check).
    out = triton_conv2d(x, weight, bias, padding=1)
    jax.block_until_ready(out)
    assert out.shape == (N, O, H, W), out.shape
    assert jnp.allclose(out, ref, atol=1e-4, rtol=1e-4), \
        float(jnp.max(jnp.abs(out - ref)))

    # bf16 fast path (inputs/weights quantized; accumulation stays f32).
    out_bf = triton_conv2d(x, weight, bias, padding=1, use_bf16=True)
    jax.block_until_ready(out_bf)
    assert jnp.allclose(out_bf, ref, atol=1e-1, rtol=1e-1), \
        float(jnp.max(jnp.abs(out_bf - ref)))

    print("KERNEL_OK")
</pallas_src>

<mosaic_0001>
module attributes {stable_mosaic.version = 11 : i64} {
  func.func @_fused_conv_kernel(%arg0: i32, %arg1: memref<1x4x384xf32, #tpu.memory_space<vmem>>, %arg2: memref<8x36xf32, #tpu.memory_space<vmem>>, %arg3: memref<8x1xf32, #tpu.memory_space<vmem>>, %arg4: memref<1x8x256xf32, #tpu.memory_space<vmem>>, %arg5: memref<36x256xf32, #tpu.memory_space<vmem>>) attributes {dimension_semantics = [#tpu.dimension_semantics<parallel>], iteration_bounds = array<i64: 2>, scalar_prefetch = 0 : i64, scratch_operands = 1 : i64, tpu.core_type = #tpu.core_type<tc>, window_params = [{transform_indices = @transform_0, window_bounds = array<i64: 1, 4, 384>}, {pipeline_mode = #tpu.pipeline_mode<synchronous>, transform_indices = @transform_1, window_bounds = array<i64: 8, 36>}, {pipeline_mode = #tpu.pipeline_mode<synchronous>, transform_indices = @transform_2, window_bounds = array<i64: 8, 1>}, {transform_indices = @transform_3, window_bounds = array<i64: 1, 8, 256>}]} {
    %0 = tpu.iota {dimensions = array<i32: 1>} : vector<1x256xi32>
    %c16_i32 = arith.constant 16 : i32
    %c0_i32 = arith.constant 0 : i32
    %1 = arith.cmpi eq, %c16_i32, %c0_i32 : i32
    %c1_i32 = arith.constant 1 : i32
    %2 = arith.select %1, %c1_i32, %c16_i32 : i32
    %3 = vector.broadcast %2 : i32 to vector<1x256xi32>
    %4 = arith.remsi %0, %3 : vector<1x256xi32>
    %c0_i32_0 = arith.constant 0 : i32
    %5 = vector.broadcast %c0_i32_0 : i32 to vector<1x256xi32>
    %6 = arith.cmpi ne, %4, %5 : vector<1x256xi32>
    %c0_i32_1 = arith.constant 0 : i32
    %7 = vector.broadcast %c0_i32_1 : i32 to vector<1x256xi32>
    %8 = arith.cmpi slt, %4, %7 : vector<1x256xi32>
    %c0_i32_2 = arith.constant 0 : i32
    %9 = arith.cmpi slt, %2, %c0_i32_2 : i32
    %10 = vector.broadcast %9 : i1 to vector<1x256xi1>
    %11 = vector.broadcast %10 : vector<1x256xi1> to vector<1x256xi1>
    %12 = arith.xori %8, %11 : vector<1x256xi1>
    %13 = arith.andi %12, %6 : vector<1x256xi1>
    %14 = vector.broadcast %2 : i32 to vector<1x256xi32>
    %15 = arith.addi %4, %14 : vector<1x256xi32>
    %16 = arith.select %13, %15, %4 : vector<1x256xi1>, vector<1x256xi32>
    %c-1_i32 = arith.constant -1 : i32
    %17 = vector.broadcast %c-1_i32 : i32 to vector<1x256xi32>
    %18 = arith.addi %16, %17 : vector<1x256xi32>
    %c0_i32_3 = arith.constant 0 : i32
    %19 = vector.broadcast %c0_i32_3 : i32 to vector<1x256xi32>
    %20 = arith.cmpi sge, %18, %19 : vector<1x256xi32>
    %c-1_i32_4 = arith.constant -1 : i32
    %21 = vector.broadcast %c-1_i32_4 : i32 to vector<1x256xi32>
    %22 = arith.addi %16, %21 : vector<1x256xi32>
    %c16_i32_5 = arith.constant 16 : i32
    %23 = vector.broadcast %c16_i32_5 : i32 to vector<1x256xi32>
    %24 = arith.cmpi slt, %22, %23 : vector<1x256xi32>
    %25 = arith.andi %20, %24 : vector<1x256xi1>
    %c1_i32_6 = arith.constant 1 : i32
    %26 = vector.broadcast %c1_i32_6 : i32 to vector<1x256xi32>
    %27 = arith.addi %16, %26 : vector<1x256xi32>
    %c0_i32_7 = arith.constant 0 : i32
    %28 = vector.broadcast %c0_i32_7 : i32 to vector<1x256xi32>
    %29 = arith.cmpi sge, %27, %28 : vector<1x256xi32>
    %c1_i32_8 = arith.constant 1 : i32
    %30 = vector.broadcast %c1_i32_8 : i32 to vector<1x256xi32>
    %31 = arith.addi %16, %30 : vector<1x256xi32>
    %c16_i32_9 = arith.constant 16 : i32
    %32 = vector.broadcast %c16_i32_9 : i32 to vector<1x256xi32>
    %33 = arith.cmpi slt, %31, %32 : vector<1x256xi32>
    %34 = arith.andi %29, %33 : vector<1x256xi1>
    %c0 = arith.constant 0 : index
    %c0_10 = arith.constant 0 : index
    %c0_11 = arith.constant 0 : index
    %35 = vector.load %arg1[%c0, %c0_10, %c0_11] : memref<1x4x384xf32, #tpu.memory_space<vmem>>, vector<1x4x256xf32>
    %36 = vector.shape_cast %35 : vector<1x4x256xf32> to vector<4x256xf32>
    %cst = arith.constant 0.000000e+00 : f32
    %37 = vector.broadcast %cst : f32 to vector<4x256xf32>
    %38 = vector.shape_cast %25 : vector<1x256xi1> to vector<1x256xi1>
    %39 = vector.broadcast %38 : vector<1x256xi1> to vector<4x256xi1>
    %40 = arith.select %39, %36, %37 : vector<4x256xi1>, vector<4x256xf32>
    %c0_12 = arith.constant 0 : index
    %c0_13 = arith.constant 0 : index
    %41 = vector.load %arg5[%c0_12, %c0_13] : memref<36x256xf32, #tpu.memory_space<vmem>>, vector<4x256xf32>
    tpu.vector_store %arg5[%c0_12, %c0_13], %40 {strides = array<i32>} : memref<36x256xf32, #tpu.memory_space<vmem>>, vector<4x256xf32>,
    %c0_14 = arith.constant 0 : index
    %c0_15 = arith.constant 0 : index
    %c1 = arith.constant 1 : index
    %42 = vector.load %arg1[%c0_14, %c0_15, %c1] : memref<1x4x384xf32, #tpu.memory_space<vmem>>, vector<1x4x256xf32>
    %43 = vector.shape_cast %42 : vector<1x4x256xf32> to vector<4x256xf32>
    %c4 = arith.constant 4 : index
    %c0_16 = arith.constant 0 : index
    %44 = vector.load %arg5[%c4, %c0_16] : memref<36x256xf32, #tpu.memory_space<vmem>>, vector<4x256xf32>
    tpu.vector_store %arg5[%c4, %c0_16], %43 {strides = array<i32>} : memref<36x256xf32, #tpu.memory_space<vmem>>, vector<4x256xf32>,
    %c0_17 = arith.constant 0 : index
    %c0_18 = arith.constant 0 : index
    %c2 = arith.constant 2 : index
    %45 = vector.load %arg1[%c0_17, %c0_18, %c2] : memref<1x4x384xf32, #tpu.memory_space<vmem>>, vector<1x4x256xf32>
    %46 = vector.shape_cast %45 : vector<1x4x256xf32> to vector<4x256xf32>
    %cst_19 = arith.constant 0.000000e+00 : f32
    %47 = vector.broadcast %cst_19 : f32 to vector<4x256xf32>
    %48 = vector.shape_cast %34 : vector<1x256xi1> to vector<1x256xi1>
    %49 = vector.broadcast %48 : vector<1x256xi1> to vector<4x256xi1>
    %50 = arith.select %49, %46, %47 : vector<4x256xi1>, vector<4x256xf32>
    %c8 = arith.constant 8 : index
    %c0_20 = arith.constant 0 : index
    %51 = vector.load %arg5[%c8, %c0_20] : memref<36x256xf32, #tpu.memory_space<vmem>>, vector<4x256xf32>
    tpu.vector_store %arg5[%c8, %c0_20], %50 {strides = array<i32>} : memref<36x256xf32, #tpu.memory_space<vmem>>, vector<4x256xf32>,
    %c0_21 = arith.constant 0 : index
    %c0_22 = arith.constant 0 : index
    %c16 = arith.constant 16 : index
    %52 = vector.load %arg1[%c0_21, %c0_22, %c16] : memref<1x4x384xf32, #tpu.memory_space<vmem>>, vector<1x4x256xf32>
    %53 = vector.shape_cast %52 : vector<1x4x256xf32> to vector<4x256xf32>
    %cst_23 = arith.constant 0.000000e+00 : f32
    %54 = vector.broadcast %cst_23 : f32 to vector<4x256xf32>
    %55 = vector.shape_cast %25 : vector<1x256xi1> to vector<1x256xi1>
    %56 = vector.broadcast %55 : vector<1x256xi1> to vector<4x256xi1>
    %57 = arith.select %56, %53, %54 : vector<4x256xi1>, vector<4x256xf32>
    %c12 = arith.constant 12 : index
    %c0_24 = arith.constant 0 : index
    %58 = vector.load %arg5[%c12, %c0_24] : memref<36x256xf32, #tpu.memory_space<vmem>>, vector<4x256xf32>
    tpu.vector_store %arg5[%c12, %c0_24], %57 {strides = array<i32>} : memref<36x256xf32, #tpu.memory_space<vmem>>, vector<4x256xf32>,
    %c0_25 = arith.constant 0 : index
    %c0_26 = arith.constant 0 : index
    %c17 = arith.constant 17 : index
    %59 = vector.load %arg1[%c0_25, %c0_26, %c17] : memref<1x4x384xf32, #tpu.memory_space<vmem>>, vector<1x4x256xf32>
    %60 = vector.shape_cast %59 : vector<1x4x256xf32> to vector<4x256xf32>
    %c16_27 = arith.constant 16 : index
    %c0_28 = arith.constant 0 : index
    %61 = vector.load %arg5[%c16_27, %c0_28] : memref<36x256xf32, #tpu.memory_space<vmem>>, vector<4x256xf32>
    tpu.vector_store %arg5[%c16_27, %c0_28], %60 {strides = array<i32>} : memref<36x256xf32, #tpu.memory_space<vmem>>, vector<4x256xf32>,
    %c0_29 = arith.constant 0 : index
    %c0_30 = arith.constant 0 : index
    %c18 = arith.constant 18 : index
    %62 = vector.load %arg1[%c0_29, %c0_30, %c18] : memref<1x4x384xf32, #tpu.memory_space<vmem>>, vector<1x4x256xf32>
    %63 = vector.shape_cast %62 : vector<1x4x256xf32> to vector<4x256xf32>
    %cst_31 = arith.constant 0.000000e+00 : f32
    %64 = vector.broadcast %cst_31 : f32 to vector<4x256xf32>
    %65 = vector.shape_cast %34 : vector<1x256xi1> to vector<1x256xi1>
    %66 = vector.broadcast %65 : vector<1x256xi1> to vector<4x256xi1>
    %67 = arith.select %66, %63, %64 : vector<4x256xi1>, vector<4x256xf32>
    %c20 = arith.constant 20 : index
    %c0_32 = arith.constant 0 : index
    %68 = vector.load %arg5[%c20, %c0_32] : memref<36x256xf32, #tpu.memory_space<vmem>>, vector<4x256xf32>
    tpu.vector_store %arg5[%c20, %c0_32], %67 {strides = array<i32>} : memref<36x256xf32, #tpu.memory_space<vmem>>, vector<4x256xf32>,
    %c0_33 = arith.constant 0 : index
    %c0_34 = arith.constant 0 : index
    %c32 = arith.constant 32 : index
    %69 = vector.load %arg1[%c0_33, %c0_34, %c32] : memref<1x4x384xf32, #tpu.memory_space<vmem>>, vector<1x4x256xf32>
    %70 = vector.shape_cast %69 : vector<1x4x256xf32> to vector<4x256xf32>
    %cst_35 = arith.constant 0.000000e+00 : f32
    %71 = vector.broadcast %cst_35 : f32 to vector<4x256xf32>
    %72 = vector.shape_cast %25 : vector<1x256xi1> to vector<1x256xi1>
    %73 = vector.broadcast %72 : vector<1x256xi1> to vector<4x256xi1>
    %74 = arith.select %73, %70, %71 : vector<4x256xi1>, vector<4x256xf32>
    %c24 = arith.constant 24 : index
    %c0_36 = arith.constant 0 : index
    %75 = vector.load %arg5[%c24, %c0_36] : memref<36x256xf32, #tpu.memory_space<vmem>>, vector<4x256xf32>
    tpu.vector_store %arg5[%c24, %c0_36], %74 {strides = array<i32>} : memref<36x256xf32, #tpu.memory_space<vmem>>, vector<4x256xf32>,
    %c0_37 = arith.constant 0 : index
    %c0_38 = arith.constant 0 : index
    %c33 = arith.constant 33 : index
    %76 = vector.load %arg1[%c0_37, %c0_38, %c33] : memref<1x4x384xf32, #tpu.memory_space<vmem>>, vector<1x4x256xf32>
    %77 = vector.shape_cast %76 : vector<1x4x256xf32> to vector<4x256xf32>
    %c28 = arith.constant 28 : index
    %c0_39 = arith.constant 0 : index
    %78 = vector.load %arg5[%c28, %c0_39] : memref<36x256xf32, #tpu.memory_space<vmem>>, vector<4x256xf32>
    tpu.vector_store %arg5[%c28, %c0_39], %77 {strides = array<i32>} : memref<36x256xf32, #tpu.memory_space<vmem>>, vector<4x256xf32>,
    %c0_40 = arith.constant 0 : index
    %c0_41 = arith.constant 0 : index
    %c34 = arith.constant 34 : index
    %79 = vector.load %arg1[%c0_40, %c0_41, %c34] : memref<1x4x384xf32, #tpu.memory_space<vmem>>, vector<1x4x256xf32>
    %80 = vector.shape_cast %79 : vector<1x4x256xf32> to vector<4x256xf32>
    %cst_42 = arith.constant 0.000000e+00 : f32
    %81 = vector.broadcast %cst_42 : f32 to vector<4x256xf32>
    %82 = vector.shape_cast %34 : vector<1x256xi1> to vector<1x256xi1>
    %83 = vector.broadcast %82 : vector<1x256xi1> to vector<4x256xi1>
    %84 = arith.select %83, %80, %81 : vector<4x256xi1>, vector<4x256xf32>
    %c32_43 = arith.constant 32 : index
    %c0_44 = arith.constant 0 : index
    %85 = vector.load %arg5[%c32_43, %c0_44] : memref<36x256xf32, #tpu.memory_space<vmem>>, vector<4x256xf32>
    tpu.vector_store %arg5[%c32_43, %c0_44], %84 {strides = array<i32>} : memref<36x256xf32, #tpu.memory_space<vmem>>, vector<4x256xf32>,
    %c0_45 = arith.constant 0 : index
    %c0_46 = arith.constant 0 : index
    %86 = vector.load %arg2[%c0_45, %c0_46] : memref<8x36xf32, #tpu.memory_space<vmem>>, vector<8x36xf32>
    %c0_47 = arith.constant 0 : index
    %c0_48 = arith.constant 0 : index
    %87 = vector.load %arg5[%c0_47, %c0_48] : memref<36x256xf32, #tpu.memory_space<vmem>>, vector<36x256xf32>
    %cst_49 = arith.constant dense<0.000000e+00> : vector<8x256xf32>
    %88 = tpu.matmul %86, %87, %cst_49 {dimension_numbers = #tpu.dot_dimension_numbers<[1], [0], [0], [1], [0, 0, 1, 1], [], []>} : vector<8x36xf32>, vector<36x256xf32>, vector<8x256xf32> -> vector<8x256xf32>
    %c0_50 = arith.constant 0 : index
    %c0_51 = arith.constant 0 : index
    %89 = vector.load %arg3[%c0_50, %c0_51] : memref<8x1xf32, #tpu.memory_space<vmem>>, vector<8x1xf32>
    %90 = vector.broadcast %89 : vector<8x1xf32> to vector<8x256xf32>
    %91 = arith.addf %88, %90 : vector<8x256xf32>
    %c0_52 = arith.constant 0 : index
    %c0_53 = arith.constant 0 : index
    %c0_54 = arith.constant 0 : index
    %92 = vector.load %arg4[%c0_52, %c0_53, %c0_54] : memref<1x8x256xf32, #tpu.memory_space<vmem>>, vector<1x8x256xf32>
    %93 = vector.shape_cast %92 : vector<1x8x256xf32> to vector<8x256xf32>
    %94 = vector.shape_cast %91 : vector<8x256xf32> to vector<1x8x256xf32>
    tpu.vector_store %arg4[%c0_52, %c0_53, %c0_54], %94 {strides = array<i32>} : memref<1x8x256xf32, #tpu.memory_space<vmem>>, vector<1x8x256xf32>,
    return
  }
  func.func @transform_0(%arg0: i32) -> (i32, i32, i32) {
    %c0_i32 = arith.constant 0 : i32
    %c0_i32_0 = arith.constant 0 : i32
    %c0_i32_1 = arith.constant 0 : i32
    return %arg0, %c0_i32, %c0_i32_0 : i32, i32, i32
  }
  func.func @transform_1(%arg0: i32) -> (i32, i32) {
    %c0_i32 = arith.constant 0 : i32
    %c0_i32_0 = arith.constant 0 : i32
    %c0_i32_1 = arith.constant 0 : i32
    return %c0_i32, %c0_i32_0 : i32, i32
  }
  func.func @transform_2(%arg0: i32) -> (i32, i32) {
    %c0_i32 = arith.constant 0 : i32
    %c0_i32_0 = arith.constant 0 : i32
    %c0_i32_1 = arith.constant 0 : i32
    return %c0_i32, %c0_i32_0 : i32, i32
  }
  func.func @transform_3(%arg0: i32) -> (i32, i32, i32) {
    %c0_i32 = arith.constant 0 : i32
    %c0_i32_0 = arith.constant 0 : i32
    %c0_i32_1 = arith.constant 0 : i32
    return %arg0, %c0_i32, %c0_i32_0 : i32, i32, i32
  }
}

</mosaic_0001>

<bundles_post_ra>
// kernel: triton_conv2d.1
= control target key start
LH: loop header
LB: loop body
LE: loop exit
PB: predicated region body
PF: predicated region fallthrough
CT: control target
= control target key end

     0   :  { %s630_s12 = smov 0   ;;  %s710_s0 = inlined_call_operand.vmem [shape: f32[2,4,384], index: 0, kind: input, shape index: {}]   ;;  %s711_s1 = inlined_call_operand.vmem [shape: f32[8,36], index: 1, kind: input, shape index: {}]   ;;  %s712_s2 = inlined_call_operand.vmem [shape: f32[8,1], index: 2, kind: input, shape index: {}]   ;;  %s713_s3 = inlined_call_operand.vmem [shape: f32[2,8,256], index: 3, kind: output, shape index: {}]  }
   0x1 LB: > { %s554_s13 = sadd.s32 4294967295, %s598_s12   ;;  %p558_p0 = scmp.ge.s32.totalorder %s598_s12, 1  ;;  %s598_s12 = sphi %s630_s12, %s13_s12  }
   0x2   : > { %p137_p1 = scmp.lt.s32.totalorder %s598_s12, 3 }
   0x4   : > { %p138_p2 = pnand %p558_p0, %p137_p1 }
   0x5   : > { %p161_p3 = scmp.lt.s32.totalorder (!%p138_p2), %s554_s13, 1  ;;  %s600_s18 = smov (!%p138_p2), 94  }
   0x6   : > { %141 = sbr.rel (%p138_p2) target bundleno = 384 (0x180), region = 32  ;;  %s601_s19 = smov (!%p138_p2), 110  }
   0x7   : > { %s602_s20 = smov (!%p138_p2), 96   ;;  %s603_s21 = smov (!%p138_p2), 95  }
   0x8   : > { %s604_s22 = smov (!%p138_p2), 112   ;;  %s605_s23 = smov (!%p138_p2), 111  }
   0x9   : > { %s606_s24 = smov (!%p138_p2), 126   ;;  %s607_s25 = smov (!%p138_p2), 127  }
   0xb   : > { %v171_v0 = vlaneseq  ;;  %s715_s13 = smov (!%p161_p3, %s554_s13), 1  ;;  %v608_v20 = vmov 0.0   ;;  %v609_v21 = vmov 0   ;;  %v409_v22 = vld [vmem:[%s712_s2] sm:$0xff]  ;;  %vm324_vm2 = vcmask 900096  }
   0xc   : > { %s568_s14 = smul.u32 12, %s715_s13  ;;  %490 = vmatprep.mubr.f32.mxu0 %v608_v20  ;;  %587 = vset.pattern.permute.xlu0 %v609_v21  ;;  %vm389_vm4 = vcmask 769024   ;;  %vm350_vm6 = vcmask 785408   ;;  %vm419_vm7 = vcmask 1043456   ;;  %vm371_vm8 = vcmask 777216   ;;  %s567_s30 = sshll.u32 %s715_s13, 4 }
   0xd   : > { %v640_v1 = vand.u32 127, %v171_v0  ;;  %vm280_vm9 = vcmask 916480   ;;  %vm306_vm10 = vcmask 908288   ;;  %vm260_vm11 = vcmask 1031168   ;;  %s170_s6 = scalar_lea.vmem %s713_s3, %s567_s30 }
   0xe   : > { %s647_s17 = scalar_lea.vmem %s710_s0, %s568_s14  ;;  %vm238_vm12 = vcmask 1039360   ;;  %vm415_vm13 = vcmask 293888  }
   0xf   : > { %v173_v2 = vadd.s32 128, %v640_v1  ;;  %v379_v3 = vld [vmem:[%s647_s17 + $0x8] sm:$0xf]  ;;  %v378_v4 = vld [vmem:[%s647_s17] sm:$0xff]  ;;  %v178_v8 = vand.u32 15, %v640_v1 }
  0x10   : > { %387 = vrot.lane.b32.xlu0 %v379_v3, %s600_s18  ;;  %383 = vrot.lane.b32.xlu1 %v378_v4, %s600_s18  ;;  %v382_v5 = vcombine.high %v378_v4, %v378_v4  ;;  %v314_v6 = vld [vmem:[%s647_s17 + $0x8] sm:$0xf]  ;;  %v363_v15 = vcombine.low %v378_v4, %v378_v4 }
  0x11   : > { %v185_v7 = vand.u32 15, %v173_v2  ;;  %v655_v10 = vadd.s32 4294967295, %v178_v8  ;;  %v340_v13 = vld [vmem:[%s647_s17 + $0x8] sm:$0xf]  ;;  %v675_v26 = vadd.s32 1, %v178_v8 }
  0x12   : > { %v590_v14 = vld [vmem:[%s647_s17 + $0x8] ss:$0 sps:$4 sm:$0xff]  }
  0x13   : > { %v653_v9 = vadd.s32 4294967295, %v185_v7  ;;  %vm200_vm1 = vcmp.ge.s32.totalorder %v655_v10, 0  ;;  %v270_v16 = vld [vmem:[%s647_s17 + $0x8] sm:$0xf]  ;;  %v672_v23 = vadd.s32 1, %v185_v7  ;;  %vm210_vm5 = vcmp.lt.s32.totalorder %v675_v26, 16 }
  0x14   : > { %322 = vrot.lane.b32.xlu0 %v314_v6, %s601_s19  ;;  %320 = vrot.lane.b32.xlu1 %v382_v5, %s601_s19  ;;  %v222_v12 = vsel %vm200_vm1, %v378_v4, 0.0  ;;  %v296_v17 = vld [vmem:[%s647_s17 + $0x8] sm:$0xf] }
  0x15   : > { %vm201_vm0 = vcmp.ge.s32.totalorder %v653_v9, 0  ;;  %224 = vst [vmem:[#allocation2 + $0x30] sm:$0xf] %v222_v12  ;;  %v246_v18 = vld [vmem:[%s647_s17 + $0x8] sm:$0xf]  ;;  %vm211_vm3 = vcmp.lt.s32.totalorder %v672_v23, 16 }
  0x16   : > { %v223_v11 = vsel %vm201_vm0, %v382_v5, 0.0  ;;  %v591_v19 = vld [vmem:[%s647_s17 + $0x8] ss:$0 sps:$4 sm:$0xff]  }
  0x17   : > { %225 = vst [vmem:[#allocation2] sm:$0xf] %v223_v11 }
  0x18   : > { %385 = vrot.lane.b32.xlu0 %v382_v5, %s600_s18  ;;  %346 = vrot.lane.b32.xlu1 %v382_v5, %s602_s20 }
  0x1c   : > { %348 = vrot.lane.b32.xlu0 %v340_v13, %s602_s20  ;;  %318 = vrot.lane.b32.xlu1 %v378_v4, %s601_s19 }
  0x20   : > { %344 = vrot.lane.b32.xlu0 %v378_v4, %s602_s20  ;;  %367 = vrot.lane.b32.xlu1 %v378_v4, %s603_s21 }
  0x24   : > { %369 = vrot.lane.b32.xlu0 %v590_v14, %s603_s21  ;;  %276 = vrot.lane.b32.xlu1 %v382_v5, %s604_s22 }
  0x28   : > { %278 = vrot.lane.b32.xlu0 %v270_v16, %s604_s22  ;;  %365 = vrot.lane.b32.xlu1 %v363_v15, %s603_s21 }
  0x2c   : > { %274 = vrot.lane.b32.xlu0 %v378_v4, %s604_s22  ;;  %302 = vrot.lane.b32.xlu1 %v382_v5, %s605_s23 }
  0x30   : > { %304 = vrot.lane.b32.xlu0 %v296_v17, %s605_s23  ;;  %256 = vrot.lane.b32.xlu1 %v382_v5, %s606_s24 }
  0x34   : > { %258 = vrot.lane.b32.xlu0 %v246_v18, %s606_s24  ;;  %300 = vrot.lane.b32.xlu1 %v378_v4, %s605_s23 }
  0x38   : > { %254 = vrot.lane.b32.xlu0 %v378_v4, %s606_s24  ;;  %234 = vrot.lane.b32.xlu1 %v378_v4, %s607_s25 }
  0x3c   : > { %236 = vrot.lane.b32.xlu0 %v591_v19, %s607_s25  ;;  %232 = vrot.lane.b32.xlu1 %v363_v15, %s607_s25 }
  0x40   : > { %412 = vperm.xlu0 %587, %v409_v22  }
  0x82   : > { %v388_v24 = vpop.permute.xlu0 %387  ;;  %v384_v25 = vpop.permute.xlu1 %383 }
  0x86   : > { %v323_v27 = vpop.permute.xlu0 %322  ;;  %v321_v28 = vpop.permute.xlu1 %320 }
  0x87   : > { %v326_v29 = vsel %vm324_vm2, %v321_v28, %v323_v27 }
  0x88   : > { %v330_v30 = vsel %vm211_vm3, %v326_v29, 0.0 }
  0x89   : > { %v334_v31 = vrot.slane %v330_v30, 4 }
  0x8a   : > { %v386_v32 = vpop.permute.xlu0 %385  ;;  %v347_v33 = vpop.permute.xlu1 %346 }
  0x8b   : > { %338 = vst [vmem:[#allocation2 + $0x28] sm:$0xf0] %v334_v31  ;;  %v390_v34 = vsel %vm389_vm4, %v384_v25, %v386_v32  ;;  %v391_v35 = vsel %vm389_vm4, %v386_v32, %v388_v24  ;;  %v398_v25 = vld [vmem:[%s711_s1] sm:$0xff] }
  0x8c   : > { %v394_v36 = vsel %vm210_vm5, %v390_v34, 0.0  ;;  %v395_v37 = vsel %vm211_vm3, %v391_v35, 0.0 }
  0x8d   : > { %396 = vst [vmem:[#allocation2 + $0x40] sm:$0xf] %v394_v36  ;;  %397 = vst [vmem:[#allocation2 + $0x38] sm:$0xf] %v395_v37 }
  0x8e   : > { %v349_v38 = vpop.permute.xlu0 %348  ;;  %v319_v39 = vpop.permute.xlu1 %318 }
  0x8f   : > { %v352_v40 = vsel %vm350_vm6, %v347_v33, %v349_v38  ;;  %v325_v41 = vsel %vm324_vm2, %v319_v39, %v321_v28 }
  0x90   : > { %v356_v42 = vsel %vm201_vm0, %v352_v40, 0.0  ;;  %v329_v43 = vsel %vm210_vm5, %v325_v41, 0.0 }
  0x91   : > { %358 = vst [vmem:[#allocation2 + $0x20] sm:$0xf] %v356_v42  ;;  %v333_v44 = vrot.slane %v329_v43, 4 }
  0x92   : > { %v345_v45 = vpop.permute.xlu0 %344  ;;  %v368_v46 = vpop.permute.xlu1 %367 }
  0x93   : > { %337 = vst [vmem:[#allocation2 + $0x48] sm:$0xf0] %v333_v44  ;;  %v351_v47 = vsel %vm350_vm6, %v345_v45, %v347_v33 }
  0x94   : > { %v355_v48 = vsel %vm200_vm1, %v351_v47, 0.0  ;;  %v408_v49 = vld [vmem:[#allocation2 + $0x38] sm:$0xf]  ;;  %v407_v50 = vld [vmem:[#allocation2 + $0x40] sm:$0xf] }
  0x95   : > { %357 = vst [vmem:[#allocation2 + $0x8] sm:$0xf] %v355_v48  ;;  %562 = vmatprep.subr.msk.mxu0 %vm419_vm7, %v408_v49 }
  0x96   : > { %563 = vmatpush1.msk.msra.mxu0 %vm419_vm7, %v407_v50  ;;  %v370_v51 = vpop.permute.xlu0 %369  ;;  %v277_v52 = vpop.permute.xlu1 %276 }
  0x97   : > { %v373_v53 = vsel %vm371_vm8, %v368_v46, %v370_v51 }
  0x98   : > { %377 = vst [vmem:[#allocation2 + $0x20] sm:$0xf0] %v373_v53 }
  0x9a   : > { %v279_v54 = vpop.permute.xlu0 %278  ;;  %v366_v55 = vpop.permute.xlu1 %365 }
  0x9b   : > { %v282_v56 = vsel %vm280_vm9, %v277_v52, %v279_v54  ;;  %v372_v57 = vsel %vm371_vm8, %v366_v55, %v368_v46 }
  0x9c   : > { %v286_v58 = vsel %vm201_vm0, %v282_v56, 0.0  ;;  %376 = vst [vmem:[#allocation2 + $0x8] sm:$0xf0] %v372_v57 }
  0x9d   : > { %v290_v59 = vrot.slane %v286_v58, 4 }
  0x9e   : > { %v275_v60 = vpop.permute.xlu0 %274  ;;  %v303_v61 = vpop.permute.xlu1 %302 }
  0x9f   : > { %294 = vst [vmem:[#allocation2 + $0x10] sm:$0xf0] %v290_v59  ;;  %v281_v62 = vsel %vm280_vm9, %v275_v60, %v277_v52  ;;  %v406_v63 = vld [vmem:[#allocation2 + $0x20] sm:$0xff] }
  0xa0   : > { %v285_v0 = vsel %vm200_vm1, %v281_v62, 0.0  ;;  %450 = vmatprep.subr.mxu0 %v406_v63 }
  0xa1   : > { %v289_v1 = vrot.slane %v285_v0, 4 }
  0xa2   : > { %v305_v2 = vpop.permute.xlu0 %304  ;;  %v257_v3 = vpop.permute.xlu1 %256 }
  0xa3   : > { %293 = vst [vmem:[#allocation2 + $0x18] sm:$0xf0] %v289_v1  ;;  %v308_v4 = vsel %vm306_vm10, %v303_v61, %v305_v2  ;;  %v405_v5 = vld [vmem:[#allocation2 + $0x8] sm:$0xff] }
  0xa4   : > { %312 = vst [vmem:[#allocation2 + $0x28] sm:$0xf] %v308_v4  ;;  %451 = vmatpush1.msra.mxu0 %v405_v5 }
  0xa6   : > { %v259_v6 = vpop.permute.xlu0 %258  ;;  %v301_v7 = vpop.permute.xlu1 %300 }
  0xa7   : > { %v262_v8 = vsel %vm260_vm11, %v257_v3, %v259_v6  ;;  %v307_v9 = vsel %vm306_vm10, %v301_v7, %v303_v61 }
  0xa8   : > { %v266_v11 = vsel %vm211_vm3, %v262_v8, 0.0  ;;  %311 = vst [vmem:[#allocation2 + $0x48] sm:$0xf] %v307_v9 }
  0xa9   : > { %268 = vst [vmem:[#allocation2 + $0x10] sm:$0xf] %v266_v11 }
  0xaa   : > { %v255_v10 = vpop.permute.xlu0 %254  ;;  %v235_v12 = vpop.permute.xlu1 %234 }
  0xab   : > { %v261_v13 = vsel %vm260_vm11, %v255_v10, %v257_v3  ;;  %v404_v14 = vld [vmem:[#allocation2 + $0x28] sm:$0xff] }
  0xac   : > { %v265_v15 = vsel %vm210_vm5, %v261_v13, 0.0  ;;  %452 = vmatprep.subr.mxu0 %v404_v14 }
  0xad   : > { %267 = vst [vmem:[#allocation2 + $0x18] sm:$0xf] %v265_v15 }
  0xae   : > { %v237_v16 = vpop.permute.xlu0 %236  ;;  %v233_v17 = vpop.permute.xlu1 %232 }
  0xaf   : > { %v240_v18 = vsel %vm238_vm12, %v235_v12, %v237_v16  ;;  %v239_v19 = vsel %vm238_vm12, %v233_v17, %v235_v12  ;;  %v403_v20 = vld [vmem:[#allocation2 + $0x48] sm:$0xff] }
  0xb0   : > { %244 = vst [vmem:[#allocation2] sm:$0xf0] %v240_v18  ;;  %243 = vst [vmem:[#allocation2 + $0x30] sm:$0xf0] %v239_v19  ;;  %453 = vmatpush1.msra.mxu0 %v403_v20  ;;  %v402_v21 = vld [vmem:[#allocation2 + $0x10] sm:$0xff] }
  0xb1   : > { %454 = vmatprep.subr.mxu0 %v402_v21 }
  0xb4   : > { %v401_v22 = vld [vmem:[#allocation2 + $0x18] sm:$0xff] }
  0xb5   : > { %455 = vmatpush1.msra.mxu0 %v401_v22 }
  0xb7   : > { %v400_v23 = vld [vmem:[#allocation2] sm:$0xff]  ;;  %v399_v24 = vld [vmem:[#allocation2 + $0x30] sm:$0xff] }
  0xb8   : > { %456 = vmatprep.subr.mxu0 %v400_v23 }
  0xb9   : > { %457 = vmatpush1.msra.mxu0 %v399_v24 }
  0xba   : > { %564 = vmatmul.mubr.msk.f32.vlgmr.msra.gmra.mxu0 %vm415_vm13, %v398_v25 }
  0xbb   : > { %v413_v26 = vpop.permute.xlu0 %412 }
 0x17a   : > { %v492_v27 = vpop.f32.mrf.mxu0 }
 0x17b   : > { %v493_v28 = vadd.f32 %v492_v27, %v413_v26 }
 0x17c   : > { %v494_v29 = vpop.f32.mrf.mxu0 }
 0x17d   : > { %497 = vst [vmem:[%s170_s6] sm:$0xff] %v493_v28  ;;  %v495_v30 = vadd.f32 %v494_v29, %v413_v26 }
 0x17f   : > { %498 = vst [vmem:[%s170_s6 + $0x8] sm:$0xff] %v495_v30 }
 0x180 PF: > { %s13_s12 = sadd.s32 1, %s598_s12  }
 0x181   : > { %p10_p4 = scmp.ge.s32.totalorder %s13_s12, 4  }
 0x183   :  { %12 = sbr.rel (!%p10_p4) target bundleno = 1 (0x1), region = 62 }

</bundles_post_ra>
